<compile_context>
chip_gen: v7x
topology: tpu7x:2x2x1
jax: 0.10.0
libtpu: 0.0.40
codegen_flags: <defaults>
</compile_context>

<pallas_src>
import jax
import jax.numpy as jnp
from jax.experimental import pallas as pl
from jax.experimental.pallas import tpu as pltpu


def _path_embedding_kernel(idx_rep_ref, table_rep_ref, out_ref):
    # idx_rep_ref:   (N, N*H)     int32   lane-expanded clamped relative-distance indices
    # table_rep_ref: (V, N*H)     float32 lane-tiled embedding rows (row vi repeated N times)
    # out_ref:       (TB, N, N*H) float32 one batch-tile of the (lane-dense) output
    v = table_rep_ref.shape[0]

    idx_rep = idx_rep_ref[...]                                   # (N, N*H)

    # Unrolled select chain over the tiny vocabulary (V = 2*valid_dist + 3).
    # Start from row 0 (entries with idx != 0 get overwritten at their matching vi),
    # so there is no zeros-init and each vocab step is one compare + one select.
    gathered = jnp.broadcast_to(table_rep_ref[0, :], idx_rep.shape)
    for vi in range(1, v):
        gathered = jnp.where(idx_rep == vi, table_rep_ref[vi, :], gathered)

    # Broadcast the gathered (N, N*H) slab across the TB batches of this tile.
    # Full-block, lane-dense store (unmasked vst when N*H % 128 == 0).
    out_ref[...] = jnp.broadcast_to(gathered[None], out_ref.shape)


def path_embedding_distance(batch_size, node_num, path_pool, position_table,
                            *, batch_tile=None, min_pallas_out_bytes=0):
    """Pallas equivalent of PathEmbeddingDistance.forward.

    path_pool:      (max_paragraph_num, max_paragraph_num) int   (precomputed, clamped+offset)
    position_table: (2*valid_dist + 3, path_hidden_size)   float32
    returns:        (batch_size, node_num, node_num, path_hidden_size) float32
    """
    assert node_num <= path_pool.shape[0] and node_num <= path_pool.shape[1], \
        "node_num exceeds path_pool extent"

    n = node_num
    v, h = position_table.shape
    per_batch_bytes = n * n * h * 4
    total_out_bytes = batch_size * per_batch_bytes

    # Tiny outputs: pallas_call launch/grid overhead dominates; plain XLA take+broadcast
    # is as fast or faster.  Disabled by default so the demo exercises the kernel.
    if total_out_bytes < min_pallas_out_bytes:
        idx = path_pool[:n, :n].astype(jnp.int32)
        pos = jnp.take(position_table, idx, axis=0)
        return jnp.broadcast_to(pos[None], (batch_size, n, n, h))

    # ---- wrapper-side layout plumbing (tiny arrays, pure XLA) ----------------------
    idx = path_pool[:n, :n].astype(jnp.int32)                    # (N, N)
    # idx_rep[i, j*H + k] = idx[i, j]  -> lane-dense index map for the kernel.
    idx_rep = jnp.repeat(idx, h, axis=1)                         # (N, N*H) int32
    # table_rep[vi, j*H + k] = table[vi, k]  -> lane-tiled embedding rows.
    table_rep = jnp.tile(position_table.astype(jnp.float32), (1, n))   # (V, N*H) float32

    # ---- batch tiling: aim for ~2 MiB output tiles ----------------------------------
    if batch_tile is None:
        batch_tile = max(1, (2 * 1024 * 1024) // per_batch_bytes)
    tb = int(max(1, min(batch_size, batch_tile)))
    grid_b = pl.cdiv(batch_size, tb)

    out_lane = n * h   # lane-dense trailing dim; multiple of 128 -> unmasked stores (perf-only)

    out_dense = pl.pallas_call(
        _path_embedding_kernel,
        out_shape=jax.ShapeDtypeStruct((batch_size, n, out_lane), jnp.float32),
        grid_spec=pltpu.PrefetchScalarGridSpec(
            num_scalar_prefetch=0,
            grid=(grid_b,),
            in_specs=[
                # Constant index maps -> blocks stay VMEM-resident across the grid.
                pl.BlockSpec((n, out_lane), lambda b: (0, 0)),   # lane-expanded indices
                pl.BlockSpec((v, out_lane), lambda b: (0, 0)),   # lane-tiled table rows
            ],
            out_specs=pl.BlockSpec((tb, n, out_lane), lambda b: (b, 0, 0)),
        ),
        compiler_params=pltpu.CompilerParams(
            # Every grid step is independent (gather recomputed per step, no scratch),
            # so the batch axis can be sharded across TensorCores on v7x.
            dimension_semantics=("parallel",),
            # ~2 MiB tiles x 2 (double-buffer) + tiny resident inputs fit comfortably in
            # 32 MiB on every generation (v7x: 64 MiB physical; v5e/v6e: 128 MiB).
            vmem_limit_bytes=32 * 1024 * 1024,
        ),
    )(idx_rep, table_rep)

    # Free reshape back to the module's (batch, N, N, H) layout.
    return out_dense.reshape(batch_size, n, n, h)


def make_path_pool(max_paragraph_num, valid_dist):
    tmp = jnp.arange(max_paragraph_num, dtype=jnp.int32)
    rel = tmp[None, :] - tmp[:, None]                     # rel[i, j] = j - i
    rel = jnp.clip(rel, -valid_dist - 1, valid_dist + 1)  # clamp out-of-range distances
    return rel + (valid_dist + 1)


def reference_forward(batch_size, node_num, path_pool, position_table):
    pos = jnp.take(position_table, path_pool[:node_num, :node_num], axis=0)
    return jnp.broadcast_to(pos[None], (batch_size, node_num, node_num, pos.shape[-1]))


if __name__ == "__main__":
    # Small, module-consistent config.
    batch_size = 2
    max_paragraph_num = 8
    node_num = 8
    valid_dist = 2
    path_hidden_size = 32
    vocab = 2 * valid_dist + 3  # 7

    key = jax.random.PRNGKey(0)
    # nn.Embedding default init ~ N(0, 1)
    position_table = jax.random.normal(key, (vocab, path_hidden_size), dtype=jnp.float32)
    path_pool = make_path_pool(max_paragraph_num, valid_dist)

    out = path_embedding_distance(batch_size, node_num, path_pool, position_table)
    out = jax.block_until_ready(out)

    ref = reference_forward(batch_size, node_num, path_pool, position_table)
    assert out.shape == (batch_size, node_num, node_num, path_hidden_size)
    assert jnp.allclose(out, ref, atol=1e-5), "mismatch vs reference (config 1)"

    # Second config: exercises a multi-step, fully parallel batch grid (B=6, TB=2 -> 3 steps).
    out2 = path_embedding_distance(6, node_num, path_pool, position_table, batch_tile=2)
    out2 = jax.block_until_ready(out2)
    ref2 = reference_forward(6, node_num, path_pool, position_table)
    assert jnp.allclose(out2, ref2, atol=1e-5), "mismatch vs reference (config 2)"

    print("KERNEL_OK")
</pallas_src>

<mosaic_0001>
module attributes {stable_mosaic.version = 11 : i64} {
  func.func @_path_embedding_kernel(%arg0: i32, %arg1: memref<8x256xi32, #tpu.memory_space<vmem>>, %arg2: memref<7x256xf32, #tpu.memory_space<vmem>>, %arg3: memref<2x8x256xf32, #tpu.memory_space<vmem>>) attributes {dimension_semantics = [#tpu.dimension_semantics<parallel>], iteration_bounds = array<i64: 1>, scalar_prefetch = 0 : i64, scratch_operands = 0 : i64, tpu.core_type = #tpu.core_type<tc>, window_params = [{pipeline_mode = #tpu.pipeline_mode<synchronous>, transform_indices = @transform_0, window_bounds = array<i64: 8, 256>}, {pipeline_mode = #tpu.pipeline_mode<synchronous>, transform_indices = @transform_1, window_bounds = array<i64: 7, 256>}, {transform_indices = @transform_2, window_bounds = array<i64: 2, 8, 256>}]} {
    %c0 = arith.constant 0 : index
    %c0_0 = arith.constant 0 : index
    %0 = vector.load %arg1[%c0, %c0_0] : memref<8x256xi32, #tpu.memory_space<vmem>>, vector<8x256xi32>
    %c0_1 = arith.constant 0 : index
    %c0_2 = arith.constant 0 : index
    %1 = vector.load %arg2[%c0_1, %c0_2] : memref<7x256xf32, #tpu.memory_space<vmem>>, vector<1x256xf32>
    %2 = vector.shape_cast %1 : vector<1x256xf32> to vector<256xf32>
    %3 = vector.shape_cast %2 : vector<256xf32> to vector<1x256xf32>
    %4 = vector.broadcast %3 : vector<1x256xf32> to vector<8x256xf32>
    %c1_i32 = arith.constant 1 : i32
    %5 = vector.broadcast %c1_i32 : i32 to vector<8x256xi32>
    %6 = arith.cmpi eq, %0, %5 : vector<8x256xi32>
    %c1 = arith.constant 1 : index
    %c0_3 = arith.constant 0 : index
    %7 = vector.load %arg2[%c1, %c0_3] : memref<7x256xf32, #tpu.memory_space<vmem>>, vector<1x256xf32>
    %8 = vector.shape_cast %7 : vector<1x256xf32> to vector<256xf32>
    %9 = vector.shape_cast %8 : vector<256xf32> to vector<1x256xf32>
    %10 = vector.broadcast %9 : vector<1x256xf32> to vector<8x256xf32>
    %11 = arith.select %6, %10, %4 : vector<8x256xi1>, vector<8x256xf32>
    %c2_i32 = arith.constant 2 : i32
    %12 = vector.broadcast %c2_i32 : i32 to vector<8x256xi32>
    %13 = arith.cmpi eq, %0, %12 : vector<8x256xi32>
    %c2 = arith.constant 2 : index
    %c0_4 = arith.constant 0 : index
    %14 = vector.load %arg2[%c2, %c0_4] : memref<7x256xf32, #tpu.memory_space<vmem>>, vector<1x256xf32>
    %15 = vector.shape_cast %14 : vector<1x256xf32> to vector<256xf32>
    %16 = vector.shape_cast %15 : vector<256xf32> to vector<1x256xf32>
    %17 = vector.broadcast %16 : vector<1x256xf32> to vector<8x256xf32>
    %18 = arith.select %13, %17, %11 : vector<8x256xi1>, vector<8x256xf32>
    %c3_i32 = arith.constant 3 : i32
    %19 = vector.broadcast %c3_i32 : i32 to vector<8x256xi32>
    %20 = arith.cmpi eq, %0, %19 : vector<8x256xi32>
    %c3 = arith.constant 3 : index
    %c0_5 = arith.constant 0 : index
    %21 = vector.load %arg2[%c3, %c0_5] : memref<7x256xf32, #tpu.memory_space<vmem>>, vector<1x256xf32>
    %22 = vector.shape_cast %21 : vector<1x256xf32> to vector<256xf32>
    %23 = vector.shape_cast %22 : vector<256xf32> to vector<1x256xf32>
    %24 = vector.broadcast %23 : vector<1x256xf32> to vector<8x256xf32>
    %25 = arith.select %20, %24, %18 : vector<8x256xi1>, vector<8x256xf32>
    %c4_i32 = arith.constant 4 : i32
    %26 = vector.broadcast %c4_i32 : i32 to vector<8x256xi32>
    %27 = arith.cmpi eq, %0, %26 : vector<8x256xi32>
    %c4 = arith.constant 4 : index
    %c0_6 = arith.constant 0 : index
    %28 = vector.load %arg2[%c4, %c0_6] : memref<7x256xf32, #tpu.memory_space<vmem>>, vector<1x256xf32>
    %29 = vector.shape_cast %28 : vector<1x256xf32> to vector<256xf32>
    %30 = vector.shape_cast %29 : vector<256xf32> to vector<1x256xf32>
    %31 = vector.broadcast %30 : vector<1x256xf32> to vector<8x256xf32>
    %32 = arith.select %27, %31, %25 : vector<8x256xi1>, vector<8x256xf32>
    %c5_i32 = arith.constant 5 : i32
    %33 = vector.broadcast %c5_i32 : i32 to vector<8x256xi32>
    %34 = arith.cmpi eq, %0, %33 : vector<8x256xi32>
    %c5 = arith.constant 5 : index
    %c0_7 = arith.constant 0 : index
    %35 = vector.load %arg2[%c5, %c0_7] : memref<7x256xf32, #tpu.memory_space<vmem>>, vector<1x256xf32>
    %36 = vector.shape_cast %35 : vector<1x256xf32> to vector<256xf32>
    %37 = vector.shape_cast %36 : vector<256xf32> to vector<1x256xf32>
    %38 = vector.broadcast %37 : vector<1x256xf32> to vector<8x256xf32>
    %39 = arith.select %34, %38, %32 : vector<8x256xi1>, vector<8x256xf32>
    %c6_i32 = arith.constant 6 : i32
    %40 = vector.broadcast %c6_i32 : i32 to vector<8x256xi32>
    %41 = arith.cmpi eq, %0, %40 : vector<8x256xi32>
    %c6 = arith.constant 6 : index
    %c0_8 = arith.constant 0 : index
    %42 = vector.load %arg2[%c6, %c0_8] : memref<7x256xf32, #tpu.memory_space<vmem>>, vector<1x256xf32>
    %43 = vector.shape_cast %42 : vector<1x256xf32> to vector<256xf32>
    %44 = vector.shape_cast %43 : vector<256xf32> to vector<1x256xf32>
    %45 = vector.broadcast %44 : vector<1x256xf32> to vector<8x256xf32>
    %46 = arith.select %41, %45, %39 : vector<8x256xi1>, vector<8x256xf32>
    %47 = vector.shape_cast %46 : vector<8x256xf32> to vector<1x8x256xf32>
    %48 = vector.shape_cast %47 : vector<1x8x256xf32> to vector<1x8x256xf32>
    %49 = vector.broadcast %48 : vector<1x8x256xf32> to vector<2x8x256xf32>
    %c0_9 = arith.constant 0 : index
    %c0_10 = arith.constant 0 : index
    %c0_11 = arith.constant 0 : index
    %50 = vector.load %arg3[%c0_9, %c0_10, %c0_11] : memref<2x8x256xf32, #tpu.memory_space<vmem>>, vector<2x8x256xf32>
    tpu.vector_store %arg3[%c0_9, %c0_10, %c0_11], %49 {strides = array<i32>} : memref<2x8x256xf32, #tpu.memory_space<vmem>>, vector<2x8x256xf32>,
    return
  }
  func.func @transform_0(%arg0: i32) -> (i32, i32) {
    %c0_i32 = arith.constant 0 : i32
    %c0_i32_0 = arith.constant 0 : i32
    %c0_i32_1 = arith.constant 0 : i32
    return %c0_i32, %c0_i32_0 : i32, i32
  }
  func.func @transform_1(%arg0: i32) -> (i32, i32) {
    %c0_i32 = arith.constant 0 : i32
    %c0_i32_0 = arith.constant 0 : i32
    %c0_i32_1 = arith.constant 0 : i32
    return %c0_i32, %c0_i32_0 : i32, i32
  }
  func.func @transform_2(%arg0: i32) -> (i32, i32, i32) {
    %c0_i32 = arith.constant 0 : i32
    %c0_i32_0 = arith.constant 0 : i32
    %c0_i32_1 = arith.constant 0 : i32
    return %arg0, %c0_i32, %c0_i32_0 : i32, i32, i32
  }
}

</mosaic_0001>

<bundles_post_ra>
// kernel: tpu_custom_call.1
= control target key start
LH: loop header
LB: loop body
LE: loop exit
PB: predicated region body
PF: predicated region fallthrough
CT: control target
= control target key end

     0   :  { %7 = vsyncpa [#allocation3], 0  ;;  %s312_s0 = inlined_call_operand.hbm [shape: s32[8,256], index: 0, kind: input, shape index: {}]   ;;  %s313_s1 = inlined_call_operand.hbm [shape: f32[7,256], index: 1, kind: input, shape index: {}]   ;;  %s314_s2 = inlined_call_operand.hbm [shape: f32[2,8,256], index: 2, kind: output, shape index: {}]  }
   0x1   :  { %8 = vsyncpa [#allocation6], 0 }
   0x2   :  { %9 = vsyncpa [#allocation4], 0  ;;  %s251_s9 = smov [#allocation2]   ;;  %s252_s11 = smov [#allocation5]  }
   0x3   :  { %s16_s10 = sshll.u32 %s251_s9, 4  ;;  %s26_s12 = sshll.u32 %s252_s11, 4  ;;  %s17_s10 = int_to_ptr.vmem [resolvable:$true] %s16_s10  ;;  %s27_s12 = int_to_ptr.vmem [resolvable:$true] %s26_s12 }
   0x4   :  { %s179_s15 = scalar_lea.hbm %s312_s0, 256 }
   0x5   :  { %p180_p0 = scmp.ne.s32.totalorder %s312_s0, %s179_s15  ;;  %p183_p1 = scmp.lt.u32.totalorder %s179_s15, %s312_s0 }
   0x7   :  { %p185_p2 = pnand %p183_p1, %p180_p0 }
   0x9   :  { %188 = shalt.err (!%p185_p2)
}
   0xa   :  { %s189_s20 = scalar_lea.vmem %s17_s10, 256  ;;  %p194_p4 = scmp.lt.s32.totalorder %s17_s10, %s17_s10 }
   0xb   :  { %p190_p3 = scmp.ne.s32.totalorder %s17_s10, %s189_s20  ;;  %p195_p5 = scmp.lt.s32.totalorder %s189_s20, %s189_s20 }
   0xd   :  { %p196_p6 = por %p195_p5, %p194_p4 }
   0xf   :  { %p197_p7 = pnand %p196_p6, %p190_p3 }
  0x11   :  { %200 = shalt.err (!%p197_p7)
}
  0x12   :  { %19 = dma.hbm_to_vmem [thread:$0]  %s312_s0, 256, %s17_s10, [#allocation3]  }
  0x13   :  { %s201_s25 = scalar_lea.hbm %s313_s1, 256 }
  0x14   :  { %p202_p8 = scmp.ne.s32.totalorder %s313_s1, %s201_s25  ;;  %p205_p9 = scmp.lt.u32.totalorder %s201_s25, %s313_s1 }
  0x16   :  { %p207_p10 = pnand %p205_p9, %p202_p8 }
  0x18   :  { %210 = shalt.err (!%p207_p10)
}
  0x19   :  { %s211_s30 = scalar_lea.vmem %s27_s12, 256  ;;  %p216_p12 = scmp.lt.s32.totalorder %s27_s12, %s27_s12 }
  0x1a   :  { %p212_p11 = scmp.ne.s32.totalorder %s27_s12, %s211_s30  ;;  %p217_p13 = scmp.lt.s32.totalorder %s211_s30, %s211_s30 }
  0x1c   :  { %p218_p0 = por %p217_p13, %p216_p12 }
  0x1e   :  { %p219_p1 = pnand %p218_p0, %p212_p11 }
  0x20   :  { %222 = shalt.err (!%p219_p1)
}
  0x21   :  { %29 = dma.hbm_to_vmem [thread:$0]  %s313_s1, 256, %s27_s12, [#allocation6]  }
  0x22   :  { %245 = dma.done.wait [#allocation3], 256  }
  0x23   :  { %246 = vsyncadd [#allocation3], 4294967040 }
  0x24   :  { %247 = dma.done.wait [#allocation6], 256  }
  0x25   :  { %248 = vsyncadd [#allocation6], 4294967040  ;;  %v40_v0 = vlaneseq  ;;  %v36_v4 = vld [vmem:[#allocation2] sm:$0xff]  ;;  %v38_v5 = vld [vmem:[#allocation5] ss:$8 sm:$0x3] }
  0x26   :  { %v37_v6 = vld [vmem:[#allocation2 + $0x8] sm:$0xff]  ;;  %vm50_vm0 = vcmp.eq.s32.totalorder %v36_v4, 1  ;;  %v53_v8 = vld [vmem:[#allocation5 + $0x1] ss:$8 sm:$0x3]  ;;  %vm67_vm1 = vcmp.eq.s32.totalorder %v36_v4, 2 }
  0x27   :  { %v41_v1 = vshrl.u32 %v40_v0, 7  ;;  %vm84_vm2 = vcmp.eq.s32.totalorder %v36_v4, 3  ;;  %v70_v10 = vld [vmem:[#allocation5 + $0x2] ss:$8 sm:$0x3]  ;;  %vm101_vm3 = vcmp.eq.s32.totalorder %v36_v4, 4 }
  0x28   :  { %v87_v11 = vld [vmem:[#allocation5 + $0x3] ss:$8 sm:$0x3]  ;;  %v104_v16 = vld [vmem:[#allocation5 + $0x4] ss:$8 sm:$0x3] }
  0x29   :  { %v42_v2 = vsub.s32 0, %v41_v1  ;;  %v46_v3 = vsub.s32 1, %v41_v1  ;;  %vm118_vm4 = vcmp.eq.s32.totalorder %v36_v4, 5  ;;  %v121_v19 = vld [vmem:[#allocation5 + $0x5] ss:$8 sm:$0x3] }
  0x2a   :  { %vm135_vm5 = vcmp.eq.s32.totalorder %v36_v4, 6  ;;  %vm51_vm6 = vcmp.eq.s32.totalorder %v37_v6, 1  ;;  %v138_v22 = vld [vmem:[#allocation5 + $0x6] ss:$8 sm:$0x3]  ;;  %vm68_vm7 = vcmp.eq.s32.totalorder %v37_v6, 2 }
  0x2b   :  { %v43_v7 = vrot.slane %v38_v5, %v42_v2  ;;  %v58_v9 = vrot.slane %v53_v8, %v42_v2  ;;  %v47_v12 = vrot.slane %v38_v5, %v46_v3  ;;  %v62_v13 = vrot.slane %v53_v8, %v46_v3  ;;  %s253_s1 = smov [#allocation7]  }
  0x2c   :  { %v75_v14 = vrot.slane %v70_v10, %v42_v2  ;;  %v92_v15 = vrot.slane %v87_v11, %v42_v2  ;;  %v109_v18 = vrot.slane %v104_v16, %v42_v2  ;;  %v126_v21 = vrot.slane %v121_v19, %v42_v2  ;;  %s161_s4 = sshll.u32 %s253_s1, 4  ;;  %s162_s4 = int_to_ptr.vmem [resolvable:$true] %s161_s4 }
  0x2d   :  { %v65_v17 = vsel %vm50_vm0, %v58_v9, %v43_v7  ;;  %v66_v23 = vsel %vm51_vm6, %v62_v13, %v47_v12  ;;  %v143_v25 = vrot.slane %v138_v22, %v42_v2  ;;  %v79_v26 = vrot.slane %v70_v10, %v46_v3  ;;  %s223_s5 = scalar_lea.vmem %s162_s4, 512  ;;  %p228_p3 = scmp.lt.s32.totalorder %s162_s4, %s162_s4 }
  0x2e   :  { %v82_v20 = vsel %vm67_vm1, %v75_v14, %v65_v17  ;;  %vm85_vm8 = vcmp.eq.s32.totalorder %v37_v6, 3  ;;  %v96_v28 = vrot.slane %v87_v11, %v46_v3  ;;  %vm102_vm9 = vcmp.eq.s32.totalorder %v37_v6, 4  ;;  %p224_p2 = scmp.ne.s32.totalorder %s162_s4, %s223_s5  ;;  %p229_p4 = scmp.lt.s32.totalorder %s223_s5, %s223_s5 }
  0x2f   :  { %v99_v24 = vsel %vm84_vm2, %v92_v15, %v82_v20  ;;  %v113_v29 = vrot.slane %v104_v16, %v46_v3  ;;  %v83_v31 = vsel %vm68_vm7, %v79_v26, %v66_v23  ;;  %vm119_vm10 = vcmp.eq.s32.totalorder %v37_v6, 5 }
  0x30   :  { %v116_v27 = vsel %vm101_vm3, %v109_v18, %v99_v24  ;;  %v130_v32 = vrot.slane %v121_v19, %v46_v3  ;;  %v100_v34 = vsel %vm85_vm8, %v96_v28, %v83_v31  ;;  %vm136_vm11 = vcmp.eq.s32.totalorder %v37_v6, 6  ;;  %p230_p5 = por %p229_p4, %p228_p3 }
  0x31   :  { %v133_v30 = vsel %vm118_vm4, %v126_v21, %v116_v27  ;;  %v147_v35 = vrot.slane %v138_v22, %v46_v3  ;;  %v117_v36 = vsel %vm102_vm9, %v113_v29, %v100_v34 }
  0x32   :  { %v150_v33 = vsel %vm135_vm5, %v143_v25, %v133_v30  ;;  %v134_v37 = vsel %vm119_vm10, %v130_v32, %v117_v36  ;;  %p231_p6 = pnand %p230_p5, %p224_p2 }
  0x33   :  { %152 = vst [vmem:[#allocation7] sm:$0xff] %v150_v33  ;;  %154 = vst [vmem:[#allocation7 + $0x10] sm:$0xff] %v150_v33  ;;  %v151_v38 = vsel %vm136_vm11, %v147_v35, %v134_v37 }
  0x34   :  { %153 = vst [vmem:[#allocation7 + $0x8] sm:$0xff] %v151_v38  ;;  %155 = vst [vmem:[#allocation7 + $0x18] sm:$0xff] %v151_v38 }
  0x35   :  { %234 = shalt.err (!%p231_p6)
}
  0x36   :  { %s235_s8 = scalar_lea.hbm %s314_s2, 512 }
  0x37   :  { %p236_p7 = scmp.ne.s32.totalorder %s314_s2, %s235_s8  ;;  %p239_p8 = scmp.lt.u32.totalorder %s235_s8, %s314_s2 }
  0x39   :  { %p241_p9 = pnand %p239_p8, %p236_p7 }
  0x3b   :  { %244 = shalt.err (!%p241_p9)
}
  0x3c   :  { %s254_s13 = smov 256   ;;  %s255_s14 = smov 16  }
  0x3d   :  { %167 = dma.vmem_to_hbm [thread:$0]  %s162_s4, 512, %s314_s2, [#allocation4], %s254_s13, %s254_s13, %s255_s14  }
  0x3e   :  { %249 = dma.done.wait [#allocation4], 512  }
  0x3f   :  { %250 = vsyncadd [#allocation4], 4294966784 }
  0x40   :  { %171 = vsyncpa [#allocation3], 1 }
  0x41   :  { %172 = vsyncpa [#allocation6], 1 }
  0x42   :  { %173 = vsyncpa [#allocation4], 1 }

</bundles_post_ra>
